<compile_context>
chip_gen: v7x
topology: tpu7x:2x2x1
jax: 0.10.0
libtpu: 0.0.40
codegen_flags: <defaults>
</compile_context>

<pallas_src>
import functools

import jax
import jax.numpy as jnp
from jax.experimental import pallas as pl
from jax.experimental.pallas import tpu as pltpu


# ----------------------------------------------------------------------------
# Constants
# ----------------------------------------------------------------------------
EMB_DIM = 512        # embedding width (4 x 128 lanes)
CONV_CH = 128        # conv stem width F (lane-dense)
KPAD = 128           # padded im2col contraction depth (9*C_in real rows, rest zero)
M_TILE_MAX = 512     # max patch rows per conv grid step (amortizes per-step overhead)
CLASS_TILE = 256     # head class tile: fills the 256-wide MXU on v6e/v7x (use 128 on v5e)
BATCH_PAD = 8        # sublane granularity for the head batch tile


def _compiler_params(semantics, approx_block_bytes):
    """dimension_semantics + conservative scoped-VMEM limit (<= 40 MiB, safe on v7x 64 MiB)."""
    vmem = int(min(max(8 * approx_block_bytes, 12 * (1 << 20)), 40 * (1 << 20)))
    return pltpu.CompilerParams(dimension_semantics=semantics,
                                vmem_limit_bytes=vmem)


def _pick_tile(total, cap):
    """Largest multiple-of-8 divisor of `total` not exceeding `cap`."""
    for cand in range(min(cap, total), 7, -8):
        if total % cand == 0 and cand % 8 == 0:
            return cand
    return total


# ----------------------------------------------------------------------------
# Wrapper-side im2col: lane-dense bf16 patches (B, H*W, KPAD)
# ----------------------------------------------------------------------------
def _build_patches(x_nchw, kpad=KPAD):
    """NCHW -> (B, H*W, KPAD) bf16 patches; contraction axis is lane-contiguous.

    Row layout: column index = tap*C + c with taps in (dh, dw) raster order, zero padded
    to KPAD=128 so the kernel runs a single full-K MXU pass."""
    B, C, H, W = x_nchw.shape
    assert 9 * C <= kpad
    xh = jnp.transpose(x_nchw, (0, 2, 3, 1))                       # NHWC
    xp = jnp.pad(xh, ((0, 0), (1, 1), (1, 1), (0, 0)))             # spatial halo
    wins = [xp[:, dh:dh + H, dw:dw + W, :] for dh in range(3) for dw in range(3)]
    patches = jnp.concatenate(wins, axis=-1)                       # (B, H, W, 9*C)
    patches = jnp.pad(patches, ((0, 0), (0, 0), (0, 0), (0, kpad - 9 * C)))
    return patches.reshape(B, H * W, kpad).astype(jnp.bfloat16)


# ----------------------------------------------------------------------------
# Kernel 1: conv3x3-as-matmul + bias + ReLU + global-average-pool (per batch sample)
# ----------------------------------------------------------------------------
def _conv_gap_kernel(p_ref, cw_ref, cb_ref, o_ref, acc_ref, *, inv_hw):
    j = pl.program_id(1)

    @pl.when(j == 0)
    def _():
        acc_ref[...] = jnp.zeros_like(acc_ref)

    # (MT, 128) bf16 x (128, F) bf16 -> f32 — pure MXU, patches are already lane-dense.
    conv = jnp.dot(p_ref[0], cw_ref[...], preferred_element_type=jnp.float32)
    conv = jnp.maximum(conv + cb_ref[...], 0.0)
    acc_ref[...] += jnp.sum(conv, axis=0, keepdims=True)            # GAP partial sum

    @pl.when(j == pl.num_programs(1) - 1)
    def _():
        o_ref[0] = acc_ref[...] * inv_hw


# ----------------------------------------------------------------------------
# Kernel 2: batched FC (pooled (B, F) -> embedding (B, 512))
# ----------------------------------------------------------------------------
def _fc_kernel(p_ref, w_ref, b_ref, o_ref):
    o_ref[...] = jnp.dot(p_ref[...].astype(jnp.bfloat16), w_ref[...],
                         preferred_element_type=jnp.float32) + b_ref[...]


def backbone_forward(x_nchw, params):
    """Stub face-embedding backbone -> (B, 512) f32 features."""
    B, _, H, W = x_nchw.shape
    conv_ch = params["conv_w"].shape[1]
    hw = H * W
    patches = _build_patches(x_nchw)
    mt = _pick_tile(hw, M_TILE_MAX)
    n_mt = hw // mt

    kern = functools.partial(_conv_gap_kernel, inv_hw=1.0 / float(hw))
    blk_bytes = mt * KPAD * 2 + KPAD * conv_ch * 2 + 3 * conv_ch * 4

    pooled = pl.pallas_call(
        kern,
        grid=(B, n_mt),
        out_shape=jax.ShapeDtypeStruct((B, 1, conv_ch), jnp.float32),
        in_specs=[
            pl.BlockSpec((1, mt, KPAD), lambda b, j: (b, j, 0)),     # lane-dense patch tile
            pl.BlockSpec((KPAD, conv_ch), lambda b, j: (0, 0)),      # replicated conv weight
            pl.BlockSpec((1, conv_ch), lambda b, j: (0, 0)),
        ],
        out_specs=pl.BlockSpec((1, 1, conv_ch), lambda b, j: (b, 0, 0)),
        scratch_shapes=[pltpu.VMEM((1, conv_ch), jnp.float32)],      # GAP accumulator
        compiler_params=_compiler_params(("parallel", "arbitrary"), blk_bytes),
    )(patches, params["conv_w"], params["conv_b"])
    pooled = pooled.reshape(B, conv_ch)

    # Single batched FC (was: one M=1 matmul per sample inside the conv finalize).
    fc_blk = B * conv_ch * 4 + conv_ch * EMB_DIM * 2 + EMB_DIM * 4 + B * EMB_DIM * 4
    emb = pl.pallas_call(
        _fc_kernel,
        grid=(1,),
        out_shape=jax.ShapeDtypeStruct((B, EMB_DIM), jnp.float32),
        in_specs=[
            pl.BlockSpec((B, conv_ch), lambda i: (0, 0)),
            pl.BlockSpec((conv_ch, EMB_DIM), lambda i: (0, 0)),
            pl.BlockSpec((1, EMB_DIM), lambda i: (0, 0)),
        ],
        out_specs=pl.BlockSpec((B, EMB_DIM), lambda i: (0, 0)),
        compiler_params=_compiler_params(("arbitrary",), fc_blk),
    )(pooled, params["fc_w"], params["fc_b"])
    return emb


# ----------------------------------------------------------------------------
# Kernel 3: ElasticArcFace head, tiled over (batch tiles, class tiles) — both parallel
# ----------------------------------------------------------------------------
def _elastic_arcface_kernel(en_ref, wn_ref, lbl_ref, cosm_ref, sinm_ref, logit_ref, *, s, tc):
    """cos = clamp(e_n @ w_n, -1, 1); logits = s * cos(acos(cos) + onehot*m)
    via cos(theta+m) = cos*cos(m) - sin(theta)*sin(m)."""
    j = pl.program_id(1)
    cos = jnp.dot(en_ref[...], wn_ref[...], preferred_element_type=jnp.float32)
    cos = jnp.clip(cos, -1.0, 1.0)

    lbl = lbl_ref[...]                                               # (tb, 1) int32
    col = jax.lax.broadcasted_iota(jnp.int32, cos.shape, 1) + j * tc  # global class index
    onehot = (col == lbl) & (lbl >= 0)

    sin_theta = jnp.sqrt(jnp.maximum(1.0 - cos * cos, 0.0))
    margined = cos * cosm_ref[...] - sin_theta * sinm_ref[...]
    logit_ref[...] = jnp.where(onehot, margined, cos) * s


def elastic_arcface_head(features, head_w, labels, margins, scale, num_classes,
                         *, tc=CLASS_TILE):
    B, D = features.shape
    CP = head_w.shape[1]
    assert CP % tc == 0
    n_ct = CP // tc

    # Hoisted (tiny) ops: embedding L2-normalization (also the id_features output) and
    # class-weight column normalization (static weights — hoist out of the train step in practice).
    feat_n = features * jax.lax.rsqrt(
        jnp.sum(features * features, axis=1, keepdims=True) + 1e-12)
    w_n = (head_w * jax.lax.rsqrt(
        jnp.sum(head_w * head_w, axis=0, keepdims=True) + 1e-12)).astype(jnp.bfloat16)

    # Pad batch to a sublane multiple so head tiles are unmasked; padded labels = -1.
    Bp = max(BATCH_PAD, ((B + BATCH_PAD - 1) // BATCH_PAD) * BATCH_PAD)
    pad = Bp - B
    e_pad = jnp.pad(feat_n, ((0, pad), (0, 0))).astype(jnp.bfloat16)
    lbl = jnp.pad(labels.astype(jnp.int32), (0, pad), constant_values=-1).reshape(Bp, 1)
    cosm = jnp.pad(jnp.cos(margins), (0, pad), constant_values=1.0
                   ).reshape(Bp, 1).astype(jnp.float32)
    sinm = jnp.pad(jnp.sin(margins), (0, pad), constant_values=0.0
                   ).reshape(Bp, 1).astype(jnp.float32)

    tb = _pick_tile(Bp, 256)
    kern = functools.partial(_elastic_arcface_kernel, s=float(scale), tc=tc)
    blk_bytes = tb * D * 2 + D * tc * 2 + 3 * tb * 4 + tb * tc * 4

    logits = pl.pallas_call(
        kern,
        grid=(Bp // tb, n_ct),
        out_shape=jax.ShapeDtypeStruct((Bp, CP), jnp.float32),
        in_specs=[
            pl.BlockSpec((tb, D), lambda i, j: (i, 0)),     # normalized embedding tile
            pl.BlockSpec((D, tc), lambda i, j: (0, j)),     # pre-normalized class-weight tile
            pl.BlockSpec((tb, 1), lambda i, j: (i, 0)),     # labels
            pl.BlockSpec((tb, 1), lambda i, j: (i, 0)),     # cos(margin)
            pl.BlockSpec((tb, 1), lambda i, j: (i, 0)),     # sin(margin)
        ],
        out_specs=pl.BlockSpec((tb, tc), lambda i, j: (i, j)),   # lane-dense logit tiles
        compiler_params=_compiler_params(("parallel", "parallel"), blk_bytes),
    )(e_pad, w_n, lbl, cosm, sinm)
    return feat_n, logits[:B, :num_classes]


# ----------------------------------------------------------------------------
# Kernel 4: student age branch — age_trans then fused [g | age_classify] matmul
# ----------------------------------------------------------------------------
def _age_adapter_kernel(f_ref, wat_ref, bat_ref, w2_ref, b2_ref, id_ref, age_ref, *, d):
    f = f_ref[...]                                                   # (B, 512) f32
    af = jnp.dot(f.astype(jnp.bfloat16), wat_ref[...],
                 preferred_element_type=jnp.float32) + bat_ref[...]
    out2 = jnp.dot(af.astype(jnp.bfloat16), w2_ref[...],
                   preferred_element_type=jnp.float32) + b2_ref[...]  # (B, 512 + 128)
    id_ref[...] = f - out2[:, :d]                                    # feat - g(age_features)
    age_ref[...] = out2[:, d:]                                       # age logits (col 0 real)


def student_age_adapter(features, params):
    B, D = features.shape
    w2 = params["age_g_cls_w"]                                       # (D, D+128) bf16
    b2 = params["age_g_cls_b"]                                       # (1, D+128) f32
    CA = w2.shape[1] - D
    kern = functools.partial(_age_adapter_kernel, d=D)
    blk = 2 * B * D * 4 + D * D * 2 + D * 4 + D * (D + CA) * 2 + (D + CA) * 4 + B * CA * 4

    id_adj, age_pad = pl.pallas_call(
        kern,
        grid=(1,),
        out_shape=(jax.ShapeDtypeStruct((B, D), jnp.float32),
                   jax.ShapeDtypeStruct((B, CA), jnp.float32)),
        in_specs=[
            pl.BlockSpec((B, D), lambda i: (0, 0)),
            pl.BlockSpec((D, D), lambda i: (0, 0)),
            pl.BlockSpec((1, D), lambda i: (0, 0)),
            pl.BlockSpec((D, D + CA), lambda i: (0, 0)),
            pl.BlockSpec((1, D + CA), lambda i: (0, 0)),
        ],
        out_specs=(pl.BlockSpec((B, D), lambda i: (0, 0)),
                   pl.BlockSpec((B, CA), lambda i: (0, 0))),
        compiler_params=_compiler_params(("arbitrary",), blk),
    )(features, params["age_trans_w"], params["age_trans_b"], w2, b2)
    return id_adj, age_pad[:, :1]                                    # age_out (B, 1)


# ----------------------------------------------------------------------------
# Parameters + full forward
# ----------------------------------------------------------------------------
def init_branch_params(key, in_ch, num_classes, *, conv_ch=CONV_CH, kpad=KPAD,
                       tc=CLASS_TILE, student=False):
    ks = jax.random.split(key, 8)
    # conv stem weight (KPAD, F); row tap*in_ch + c matches _build_patches column order.
    w_taps = jax.random.normal(ks[0], (9 * in_ch, conv_ch), jnp.float32) * 0.1
    conv_w = jnp.zeros((kpad, conv_ch), jnp.float32).at[:9 * in_ch].set(w_taps)
    cp = ((num_classes + tc - 1) // tc) * tc
    head = jax.random.normal(ks[2], (EMB_DIM, num_classes), jnp.float32) * 0.01
    head_w = jnp.zeros((EMB_DIM, cp), jnp.float32).at[:, :num_classes].set(head)
    params = dict(
        num_classes=num_classes,
        conv_w=conv_w.astype(jnp.bfloat16),
        conv_b=jnp.zeros((1, conv_ch), jnp.float32),
        fc_w=(jax.random.normal(ks[1], (conv_ch, EMB_DIM), jnp.float32) * 0.05
              ).astype(jnp.bfloat16),
        fc_b=jnp.zeros((1, EMB_DIM), jnp.float32),
        head_w=head_w,                          # f32; normalized per forward in the wrapper
    )
    if student:
        g_w = jax.random.normal(ks[4], (EMB_DIM, EMB_DIM), jnp.float32) * 0.02
        cls_w = jax.random.normal(ks[5], (EMB_DIM, 1), jnp.float32) * 0.02
        cls_pad = jnp.zeros((EMB_DIM, 128), jnp.float32).at[:, :1].set(cls_w)
        params.update(
            age_trans_w=(jax.random.normal(ks[3], (EMB_DIM, EMB_DIM), jnp.float32) * 0.02
                         ).astype(jnp.bfloat16),
            age_trans_b=jnp.zeros((1, EMB_DIM), jnp.float32),
            # fused RHS [g_w | age_cls_w(padded to 128 lanes)] -> one MXU pass
            age_g_cls_w=jnp.concatenate([g_w, cls_pad], axis=1).astype(jnp.bfloat16),
            age_g_cls_b=jnp.zeros((1, EMB_DIM + 128), jnp.float32),
        )
    return params


def ada_translearn_elasticd2_forward(x, labels, teacher_params, student_params, key=None,
                                     *, margin=0.1, scale=64.0, std=0.0125,
                                     margins_t=None, margins_s=None):
    """Returns (id_features_s, id_features_t, id_class_s, id_class_t, age_out)."""
    B = labels.shape[0]
    if margins_t is None or margins_s is None:
        kt, ks2 = jax.random.split(key)
        if margins_t is None:   # ElasticArcFace samples margin ~ N(m, std) per sample
            margins_t = margin + std * jax.random.normal(kt, (B,), jnp.float32)
        if margins_s is None:
            margins_s = margin + std * jax.random.normal(ks2, (B,), jnp.float32)

    # teacher branch
    feat_t = backbone_forward(x, teacher_params)
    id_features_t, id_class_t = elastic_arcface_head(
        feat_t, teacher_params["head_w"], labels, margins_t, scale,
        teacher_params["num_classes"])

    # student branch (age-disentangling adapter before the head)
    feat_s = backbone_forward(x, student_params)
    id_adj, age_out = student_age_adapter(feat_s, student_params)
    id_features_s, id_class_s = elastic_arcface_head(
        id_adj, student_params["head_w"], labels, margins_s, scale,
        student_params["num_classes"])

    return id_features_s, id_features_t, id_class_s, id_class_t, age_out


# ----------------------------------------------------------------------------
# Pure-JAX f32 reference (correctness check of the demo run)
# ----------------------------------------------------------------------------
def _reference_forward(x, labels, margins_t, margins_s, tp, sp, *, scale=64.0):
    def backbone(p):
        patches = _build_patches(x).astype(jnp.float32)    # same bf16 im2col quantization
        conv = jnp.einsum("bmk,kf->bmf", patches, p["conv_w"].astype(jnp.float32))
        conv = jnp.maximum(conv + p["conv_b"][None], 0.0)
        pooled = conv.mean(axis=1)
        return pooled @ p["fc_w"].astype(jnp.float32) + p["fc_b"]

    def head(emb, p, margins):
        e_n = emb * jax.lax.rsqrt(jnp.sum(emb * emb, axis=1, keepdims=True) + 1e-12)
        w = p["head_w"]
        w_n = w * jax.lax.rsqrt(jnp.sum(w * w, axis=0, keepdims=True) + 1e-12)
        cos = jnp.clip(e_n @ w_n, -1.0, 1.0)
        col = jnp.arange(cos.shape[1])[None, :]
        onehot = (col == labels[:, None]) & (labels[:, None] >= 0)
        sin_t = jnp.sqrt(jnp.maximum(1.0 - cos * cos, 0.0))
        cm, sm = jnp.cos(margins)[:, None], jnp.sin(margins)[:, None]
        logits = jnp.where(onehot, cos * cm - sin_t * sm, cos) * scale
        return e_n, logits[:, :p["num_classes"]]

    feat_t = backbone(tp)
    id_t, cls_t = head(feat_t, tp, margins_t)
    feat_s = backbone(sp)
    af = feat_s @ sp["age_trans_w"].astype(jnp.float32) + sp["age_trans_b"]
    out2 = af @ sp["age_g_cls_w"].astype(jnp.float32) + sp["age_g_cls_b"]
    age = out2[:, EMB_DIM:EMB_DIM + 1]
    id_adj = feat_s - out2[:, :EMB_DIM]
    id_s, cls_s = head(id_adj, sp, margins_s)
    return id_s, id_t, cls_s, cls_t, age


# ----------------------------------------------------------------------------
# Demo
# ----------------------------------------------------------------------------
if __name__ == "__main__":
    NUM_CLASSES = 16
    B, C, H, W = 2, 3, 16, 16

    root = jax.random.PRNGKey(0)
    k_x, k_t, k_s, k_m = jax.random.split(root, 4)

    x = jax.random.normal(k_x, (B, C, H, W), jnp.float32)        # NCHW like PyTorch
    labels = jnp.array([1, 5], dtype=jnp.int32)

    teacher_params = init_branch_params(k_t, C, NUM_CLASSES, student=False)
    student_params = init_branch_params(k_s, C, NUM_CLASSES, student=True)

    kt, ks2 = jax.random.split(k_m)
    margins_t = 0.1 + 0.0125 * jax.random.normal(kt, (B,), jnp.float32)
    margins_s = 0.1 + 0.0125 * jax.random.normal(ks2, (B,), jnp.float32)

    outs = ada_translearn_elasticd2_forward(
        x, labels, teacher_params, student_params,
        margins_t=margins_t, margins_s=margins_s, scale=64.0)
    outs = jax.block_until_ready(outs)
    id_s, id_t, cls_s, cls_t, age_out = outs

    # interface checks
    assert id_s.shape == (B, EMB_DIM) and id_t.shape == (B, EMB_DIM)
    assert cls_s.shape == (B, NUM_CLASSES) and cls_t.shape == (B, NUM_CLASSES)
    assert age_out.shape == (B, 1)
    assert jnp.allclose(jnp.sum(id_s ** 2, axis=1), 1.0, atol=1e-3)
    assert jnp.allclose(jnp.sum(id_t ** 2, axis=1), 1.0, atol=1e-3)

    # pure-JAX f32 reference; tolerances cover the bf16 MXU inputs
    rid_s, rid_t, rcls_s, rcls_t, rage = _reference_forward(
        x, labels, margins_t, margins_s, teacher_params, student_params, scale=64.0)
    assert jnp.allclose(id_t, rid_t, atol=1e-2)
    assert jnp.allclose(id_s, rid_s, atol=1e-2)
    assert jnp.allclose(cls_t, rcls_t, atol=0.5)
    assert jnp.allclose(cls_s, rcls_s, atol=0.5)
    assert jnp.allclose(age_out, rage, atol=2e-2)

    print("KERNEL_OK")
</pallas_src>

<mosaic_0001>
module attributes {stable_mosaic.version = 11 : i64} {
  func.func @_conv_gap_kernel(%arg0: i32, %arg1: i32, %arg2: memref<1x256x128xbf16, #tpu.memory_space<vmem>>, %arg3: memref<128x128xbf16, #tpu.memory_space<vmem>>, %arg4: memref<1x128xf32, #tpu.memory_space<vmem>>, %arg5: memref<1x1x128xf32, #tpu.memory_space<vmem>>, %arg6: memref<1x128xf32, #tpu.memory_space<vmem>>) attributes {dimension_semantics = [#tpu.dimension_semantics<parallel>, #tpu.dimension_semantics<arbitrary>], iteration_bounds = array<i64: 2, 1>, scalar_prefetch = 0 : i64, scratch_operands = 1 : i64, tpu.core_type = #tpu.core_type<tc>, window_params = [{transform_indices = @transform_0, window_bounds = array<i64: 1, 256, 128>}, {pipeline_mode = #tpu.pipeline_mode<synchronous>, transform_indices = @transform_1, window_bounds = array<i64: 128, 128>}, {pipeline_mode = #tpu.pipeline_mode<synchronous>, transform_indices = @transform_2, window_bounds = array<i64: 1, 128>}, {transform_indices = @transform_3, window_bounds = array<i64: 1, 1, 128>}]} {
    %c0_i32 = arith.constant 0 : i32
    %0 = arith.cmpi eq, %arg1, %c0_i32 : i32
    %1 = arith.extui %0 : i1 to i32
    %c0_i32_0 = arith.constant 0 : i32
    %2 = arith.cmpi ne, %1, %c0_i32_0 : i32
    scf.if %2 {
      %cst_15 = arith.constant 0.000000e+00 : f32
      %20 = vector.broadcast %cst_15 : f32 to vector<1x128xf32>
      %c0_16 = arith.constant 0 : index
      %c0_17 = arith.constant 0 : index
      %21 = vector.load %arg6[%c0_16, %c0_17] : memref<1x128xf32, #tpu.memory_space<vmem>>, vector<1x128xf32>
      tpu.vector_store %arg6[%c0_16, %c0_17], %20 {strides = array<i32>} : memref<1x128xf32, #tpu.memory_space<vmem>>, vector<1x128xf32>,
    } else {
    }
    %c0 = arith.constant 0 : index
    %c0_1 = arith.constant 0 : index
    %c0_2 = arith.constant 0 : index
    %3 = vector.load %arg2[%c0, %c0_1, %c0_2] : memref<1x256x128xbf16, #tpu.memory_space<vmem>>, vector<1x256x128xbf16>
    %4 = vector.shape_cast %3 : vector<1x256x128xbf16> to vector<256x128xbf16>
    %c0_3 = arith.constant 0 : index
    %c0_4 = arith.constant 0 : index
    %5 = vector.load %arg3[%c0_3, %c0_4] : memref<128x128xbf16, #tpu.memory_space<vmem>>, vector<128x128xbf16>
    %cst = arith.constant dense<0.000000e+00> : vector<256x128xf32>
    %6 = tpu.matmul %4, %5, %cst {dimension_numbers = #tpu.dot_dimension_numbers<[1], [0], [0], [1], [0, 0, 1, 1], [], []>} : vector<256x128xbf16>, vector<128x128xbf16>, vector<256x128xf32> -> vector<256x128xf32>
    %c0_5 = arith.constant 0 : index
    %c0_6 = arith.constant 0 : index
    %7 = vector.load %arg4[%c0_5, %c0_6] : memref<1x128xf32, #tpu.memory_space<vmem>>, vector<1x128xf32>
    %8 = vector.broadcast %7 : vector<1x128xf32> to vector<256x128xf32>
    %9 = arith.addf %6, %8 : vector<256x128xf32>
    %cst_7 = arith.constant 0.000000e+00 : f32
    %10 = vector.broadcast %cst_7 : f32 to vector<256x128xf32>
    %11 = arith.maximumf %9, %10 : vector<256x128xf32>
    %c0_8 = arith.constant 0 : index
    %c0_9 = arith.constant 0 : index
    %12 = vector.load %arg6[%c0_8, %c0_9] : memref<1x128xf32, #tpu.memory_space<vmem>>, vector<1x128xf32>
    %cst_10 = arith.constant dense<0.000000e+00> : vector<128xf32>
    %13 = vector.multi_reduction <add>, %11, %cst_10 [0] : vector<256x128xf32> to vector<128xf32>
    %14 = vector.shape_cast %13 : vector<128xf32> to vector<1x128xf32>
    %15 = arith.addf %12, %14 : vector<1x128xf32>
    %c0_11 = arith.constant 0 : index
    %c0_12 = arith.constant 0 : index
    %16 = vector.load %arg6[%c0_11, %c0_12] : memref<1x128xf32, #tpu.memory_space<vmem>>, vector<1x128xf32>
    tpu.vector_store %arg6[%c0_11, %c0_12], %15 {strides = array<i32>} : memref<1x128xf32, #tpu.memory_space<vmem>>, vector<1x128xf32>,
    %c0_i32_13 = arith.constant 0 : i32
    %17 = arith.cmpi eq, %arg1, %c0_i32_13 : i32
    %18 = arith.extui %17 : i1 to i32
    %c0_i32_14 = arith.constant 0 : i32
    %19 = arith.cmpi ne, %18, %c0_i32_14 : i32
    scf.if %19 {
      %c0_15 = arith.constant 0 : index
      %c0_16 = arith.constant 0 : index
      %20 = vector.load %arg6[%c0_15, %c0_16] : memref<1x128xf32, #tpu.memory_space<vmem>>, vector<1x128xf32>
      %cst_17 = arith.constant 3.906250e-03 : f32
      %21 = vector.broadcast %cst_17 : f32 to vector<1x128xf32>
      %22 = arith.mulf %20, %21 : vector<1x128xf32>
      %c0_18 = arith.constant 0 : index
      %c0_19 = arith.constant 0 : index
      %c0_20 = arith.constant 0 : index
      %23 = vector.load %arg5[%c0_18, %c0_19, %c0_20] : memref<1x1x128xf32, #tpu.memory_space<vmem>>, vector<1x1x128xf32>
      %24 = vector.shape_cast %23 : vector<1x1x128xf32> to vector<1x128xf32>
      %25 = vector.shape_cast %22 : vector<1x128xf32> to vector<1x1x128xf32>
      tpu.vector_store %arg5[%c0_18, %c0_19, %c0_20], %25 {strides = array<i32>} : memref<1x1x128xf32, #tpu.memory_space<vmem>>, vector<1x1x128xf32>,
    } else {
    }
    return
  }
  func.func @transform_0(%arg0: i32, %arg1: i32) -> (i32, i32, i32) {
    %c0_i32 = arith.constant 0 : i32
    %c0_i32_0 = arith.constant 0 : i32
    return %arg0, %arg1, %c0_i32 : i32, i32, i32
  }
  func.func @transform_1(%arg0: i32, %arg1: i32) -> (i32, i32) {
    %c0_i32 = arith.constant 0 : i32
    %c0_i32_0 = arith.constant 0 : i32
    %c0_i32_1 = arith.constant 0 : i32
    return %c0_i32, %c0_i32_0 : i32, i32
  }
  func.func @transform_2(%arg0: i32, %arg1: i32) -> (i32, i32) {
    %c0_i32 = arith.constant 0 : i32
    %c0_i32_0 = arith.constant 0 : i32
    %c0_i32_1 = arith.constant 0 : i32
    return %c0_i32, %c0_i32_0 : i32, i32
  }
  func.func @transform_3(%arg0: i32, %arg1: i32) -> (i32, i32, i32) {
    %c0_i32 = arith.constant 0 : i32
    %c0_i32_0 = arith.constant 0 : i32
    %c0_i32_1 = arith.constant 0 : i32
    return %arg0, %c0_i32, %c0_i32_0 : i32, i32, i32
  }
}

</mosaic_0001>

<bundles_post_ra>
// kernel: tpu_custom_call.1
= control target key start
LH: loop header
LB: loop body
LE: loop exit
PB: predicated region body
PF: predicated region fallthrough
CT: control target
= control target key end

     0   :  { %8 = vsyncpa [#allocation4], 0  ;;  %s1473_s0 = inlined_call_operand.hbm [shape: bf16[2,256,128], index: 0, kind: input, shape index: {}]   ;;  %s1474_s1 = inlined_call_operand.hbm [shape: bf16[128,128], index: 1, kind: input, shape index: {}]   ;;  %s1475_s2 = inlined_call_operand.vmem [shape: f32[1,128], index: 2, kind: input, shape index: {}]   ;;  %s1476_s3 = inlined_call_operand.hbm [shape: f32[2,1,128], index: 3, kind: output, shape index: {}]  }
   0x1   :  { %10 = vsyncpa [#allocation4 + $0x1], 0 }
   0x2   :  { %11 = vsyncpa [#allocation7], 0 }
   0x3   :  { %12 = vsyncpa [#allocation5], 0 }
   0x4   :  { %14 = vsyncpa [#allocation5 + $0x1], 0  ;;  %s1164_s12 = smov 0   ;;  %s1166_s13 = smov 0  }
   0x5   :  { %s1168_s14 = smov 0   ;;  %s1170_s15 = smov 0  }
   0x6   :  { %s1172_s16 = smov 0   ;;  %s1174_s17 = smov 0  }
   0x7 LB: > { %s764_s18 = sadd.s32 4294967295, %s1136_s17   ;;  %s765_s19 = sadd.s32 4294967294, %s1136_s17   ;;  %s1136_s17 = sphi %s1174_s17, %s20_s17   ;;  %s1132_s16 = sphi %s1172_s16, %s1500_s16   ;;  %s1128_s15 = sphi %s1170_s15, %s1499_s15   ;;  %s1124_s14 = sphi %s1168_s14, %s1498_s14   ;;  %s1120_s13 = sphi %s1166_s13, %s1497_s13   ;;  %s1116_s12 = sphi %s1164_s12, %s1496_s12  }
   0x8   : > { %p54_p0 = scmp.ne.s32.totalorder %s1120_s13, %s1116_s12  ;;  %p1198_p1 = scmp.eq.s32.totalorder %s764_s18, 0 }
   0x9   : > { %p1202_p2 = scmp.eq.s32.totalorder %s764_s18, 1  ;;  %p126_p3 = scmp.eq.s32.totalorder %s765_s19, 1 }
   0xa   : > { %s1481_s20 = scalar_select %p1198_p1, 1, 0 }
   0xb   : > { %s1482_s21 = scalar_select %p1202_p2, 1, 0 }
   0xc   : > { %p1208_p4 = por %p1198_p1, %p54_p0  ;;  %p766_p5 = scmp.ge.s32.totalorder %s1136_s17, 1 }
   0xd   : > { %p1213_p6 = por %p126_p3, %p54_p0  ;;  %p133_p7 = scmp.lt.s32.totalorder %s1136_s17, 3 }
   0xe   : > { %s1483_s22 = scalar_select %p1208_p4, 1, 0 }
   0xf   : > { %s1484_s23 = scalar_select %p1213_p6, 1, 0 }
  0x10   : > { %p1218_p8 = pnand %p766_p5, %p133_p7  ;;  %s1138_s25 = smov [#allocation6]  }
  0x11   : > { %s145_s26 = sshll.u32 %s1138_s25, 4  ;;  %s32_s28 = sadd.s32 1, %s1132_s16  ;;  %s146_s26 = int_to_ptr.vmem [resolvable:$true] %s145_s26 }
  0x12   : > { %s1485_s24 = scalar_select %p1218_p8, 1, 0 }
  0x13   : > { %p900_p9 = pneg %p1218_p8  ;;  %s992_s4 = scalar_lea.hbm %s1474_s1, 1024 }
  0x14   : > { %p993_p12 = scmp.ne.s32.totalorder %s1474_s1, %s992_s4  ;;  %p999_p5 = scmp.lt.u32.totalorder %s992_s4, %s1474_s1 }
  0x15   : > { %p1227_p11 = pnand %p900_p9, %p1198_p1 }
  0x17   : > { %p994_p13 = pneg %p1227_p11 }
  0x19   : > { %p995_p0 = pnand %p994_p13, %p993_p12 }
  0x1b   : > { %p996_p3 = pneg %p995_p0 }
  0x1d   : > { %p1001_p7 = pnand %p999_p5, %p996_p3 }
  0x1f   : > { %1004 = shalt.err (!%p1001_p7)
}
  0x20   : > { %s1005_s9 = scalar_lea.vmem %s146_s26, 1024  ;;  %p1013_p1 = scmp.lt.s32.totalorder %s146_s26, %s146_s26 }
  0x21   : > { %p1006_p9 = scmp.ne.s32.totalorder %s146_s26, %s1005_s9  ;;  %p1014_p4 = scmp.lt.s32.totalorder %s1005_s9, %s1005_s9 }
  0x23   : > { %p1008_p10 = pnand %p1006_p9, %p994_p13  ;;  %p1015_p8 = por %p1014_p4, %p1013_p1 }
  0x25   : > { %p1009_p6 = pneg %p1008_p10 }
  0x27   : > { %p1016_p2 = pnand %p1015_p8, %p1009_p6 }
  0x29   : > { %1019 = shalt.err (!%p1016_p2)
}
  0x2a   : > { %s1139_s10 = smov 64   ;;  %s1140_s11 = smov 4  }
  0x2b   : > { %903 = dma.hbm_to_vmem [thread:$0]  (!%p1227_p11), %s1474_s1, 1024, %s146_s26, [#allocation7], %s1139_s10, %s1139_s10, %s1140_s11  }
  0x2c   : > { %p34_p1 = scmp.ge.s32.totalorder %s32_s28, 2  ;;  %s41_s25 = sadd.s32 1, %s1124_s14 }
  0x2d   : > { %p48_p2 = scmp.ne.s32.totalorder %s1124_s14, %s1120_s13  ;;  %p49_p4 = scmp.eq.s32.totalorder %s1136_s17, 0 }
  0x2e   : > { %s1502_s28 = smov (%p34_p1, %s32_s28), 0  ;;  %p1488_p8 = scmp.ne.s32.totalorder %s1482_s21, 0 }
  0x2f   : > { %p1257_p6 = por %p49_p4, %p48_p2  ;;  %s36_s30 = ssub.s32 %s1132_s16, %s1502_s28 }
  0x30   : > { %p1263_p10 = por %p1488_p8, %p48_p2  ;;  %p913_p12 = scmp.lt.s32.totalorder %s1136_s17, 2 }
  0x31   : > { %p39_p11 = scmp.eq.s32.totalorder %s36_s30, 0  ;;  %s162_s26 = sand.u32 1, %s1124_s14  }
  0x32   : > { %s769_s4 = sshll.u32 %s162_s26, 7  ;;  %s803_s6 = sshll.u32 %s1132_s16, 11 }
  0x33   : > { %s1272_s5 = scalar_select %p39_p11, %s1124_s14, %s41_s25  }
  0x34   : > { %s1278_s9 = scalar_lea.hbm %s1473_s0, %s803_s6  ;;  %s166_s21 = scalar_lea.vmem [#allocation3], %s769_s4 }
  0x35   : > { %s175_s18 = sshll.u32 %s166_s21, 4  ;;  %p1284_p13 = pnand %p913_p12, %p1257_p6  ;;  %s1280_s18 = int_to_ptr.vmem [resolvable:$true] %s175_s18 }
  0x36   : > { %s1288_s25 = scalar_lea.sflag [#allocation4], %s162_s26  ;;  %s1020_s30 = scalar_lea.hbm %s1278_s9, 2048 }
  0x37   : > { %p1021_p0 = scmp.ne.s32.totalorder %s1278_s9, %s1020_s30  ;;  %p1022_p3 = pneg %p1284_p13 }
  0x38   : > { %s1025_s29 = scalar_lea.hbm %s1473_s0, 4096  ;;  %p1026_p9 = scmp.lt.u32.totalorder %s1278_s9, %s1473_s0 }
  0x39   : > { %p1023_p5 = pnand %p1022_p3, %p1021_p0  ;;  %p1027_p1 = scmp.lt.u32.totalorder %s1025_s29, %s1020_s30 }
  0x3a   : > { %p1029_p4 = scmp.lt.u32.totalorder %s1020_s30, %s1278_s9 }
  0x3b   : > { %p1024_p7 = pneg %p1023_p5  ;;  %p1028_p2 = por %p1027_p1, %p1026_p9 }
  0x3d   : > { %p1030_p6 = por %p1029_p4, %p1028_p2 }
  0x3f   : > { %p1031_p8 = pnand %p1030_p6, %p1024_p7 }
  0x41   : > { %1034 = shalt.err (!%p1031_p8)
}
  0x42   : > { %s1035_s26 = scalar_lea.vmem %s1280_s18, 2048  ;;  %s1141_s21 = smov [#allocation3]  }
  0x43   : > { %p1036_p12 = scmp.ne.s32.totalorder %s1280_s18, %s1035_s26  ;;  %s1040_s4 = sshll.u32 %s1141_s21, 4  ;;  %s1041_s4 = int_to_ptr.vmem [resolvable:$false] %s1040_s4 }
  0x44   : > { %s1042_s6 = scalar_lea.vmem %s1041_s4, 4096  ;;  %p1043_p5 = scmp.lt.s32.totalorder %s1280_s18, %s1041_s4 }
  0x45   : > { %p1038_p11 = pnand %p1036_p12, %p1022_p3  ;;  %p1044_p9 = scmp.lt.s32.totalorder %s1042_s6, %s1035_s26 }
  0x47   : > { %p1039_p0 = pneg %p1038_p11  ;;  %p1045_p1 = por %p1044_p9, %p1043_p5 }
  0x49   : > { %p1046_p2 = pnand %p1045_p1, %p1039_p0 }
  0x4b   : > { %1049 = shalt.err (!%p1046_p2)
}
  0x4c   : > { %907 = dma.hbm_to_vmem [thread:$0]  (!%p1284_p13), %s1278_s9, 2048, %s1280_s18, %s1288_s25, %s1139_s10, %s1139_s10, %s1140_s11  }
  0x4d   : > { %p1491_p3 = scmp.ne.s32.totalorder %s1485_s24, 0 }
  0x4e   : > { %s1322_s30 = sand.u32 (!%p1491_p3), 1, %s1120_s13   ;;  %p1492_p7 = scmp.ne.s32.totalorder (!%p1491_p3), %s1483_s22, 0 }
  0x4f   : > { %187 = sbr.rel (%p1491_p3) target bundleno = 442 (0x1ba), region = 32  ;;  %s773_s29 = sshll.u32 (!%p1491_p3), %s1322_s30, 7 }
  0x50   : > { %s190_s7 = scalar_lea.sflag (!%p1491_p3), [#allocation4], %s1322_s30  ;;  %s1326_s8 = scalar_lea.vmem (!%p1491_p3), [#allocation3], %s773_s29 }
  0x56   : > { %1103 = dma.done.wait (%p1492_p7), %s190_s7, 2048  }
  0x57   : > { %1105 = vsyncadd (%p1492_p7), %s190_s7, 4294965248  ;;  %p1493_p13 = scmp.ne.s32.totalorder %s1481_s20, 0 }
  0x59   : > { %1107 = dma.done.wait (%p1493_p13), [#allocation7], 1024  }
  0x5a   : > { %1109 = vsyncadd (%p1493_p13), [#allocation7], 4294966272  ;;  %v968_v0 = vld [vmem:[#allocation6] sm:$0xff]   ;;  %v969_v1 = vld [vmem:[#allocation6 + $0x8] sm:$0xff]   ;;  %v1142_v24 = vmov 0.0   ;;  %s800_s24 = sshll.u32 %s1128_s15, 4 }
  0x5b   : > { %828 = vmatprep.subr.bf16.mxu0 %v968_v0  ;;  %876 = vmatprep.subr.bf16.mxu1 %v968_v0  ;;  %v970_v2 = vld [vmem:[#allocation6 + $0x10] sm:$0xff]   ;;  %v971_v3 = vld [vmem:[#allocation6 + $0x18] sm:$0xff]   ;;  %v976_v4 = vld [vmem:[%s1326_s8] sm:$0xff]   ;;  %225 = vst [vmem:[#allocation2] sm:$0x1] %v1142_v24  ;;  %s218_s10 = scalar_lea.vmem [#allocation8], %s1322_s30  ;;  %s1424_s19 = scalar_lea.hbm %s1476_s3, %s800_s24 }
  0x5c   : > { %829 = vmatpush3.bf16.msra.mxu0 %v968_v0  ;;  %884 = vmatpush3.bf16.msra.mxu1 %v968_v0  ;;  %v972_v5 = vld [vmem:[#allocation6 + $0x20] sm:$0xff]   ;;  %v973_v6 = vld [vmem:[#allocation6 + $0x28] sm:$0xff]   ;;  %v974_v8 = vld [vmem:[#allocation6 + $0x30] sm:$0xff]   ;;  %s677_s11 = sshll.u32 %s218_s10, 4  ;;  %s665_s25 = scalar_lea.sflag [#allocation5], %s1322_s30  ;;  %s1426_s11 = int_to_ptr.vmem [resolvable:$true] %s677_s11 }
  0x5d   : > { %830 = vmatprep.subr.bf16.mxu0 %v969_v1  ;;  %877 = vmatprep.subr.bf16.mxu1 %v969_v1  ;;  %v984_v7 = vld [vmem:[%s1326_s8 + $0x40] sm:$0xff]   ;;  %v975_v9 = vld [vmem:[#allocation6 + $0x38] sm:$0xff]   ;;  %v977_v10 = vld [vmem:[%s1326_s8 + $0x8] sm:$0xff]   ;;  %s1050_s26 = scalar_lea.vmem %s1426_s11, 16  ;;  %s1143_s15 = smov [#allocation8]  }
  0x5e   : > { %844 = vmatprep.mubr.bf16.mxu0 %v976_v4  ;;  %860 = vmatprep.mubr.bf16.mxu1 %v984_v7  ;;  %v985_v11 = vld [vmem:[%s1326_s8 + $0x48] sm:$0xff]   ;;  %v978_v12 = vld [vmem:[%s1326_s8 + $0x10] sm:$0xff]   ;;  %v979_v14 = vld [vmem:[%s1326_s8 + $0x18] sm:$0xff]   ;;  %p1051_p4 = scmp.ne.s32.totalorder %s1426_s11, %s1050_s26  ;;  %s1054_s21 = sshll.u32 %s1143_s15, 4  ;;  %s1055_s21 = int_to_ptr.vmem [resolvable:$false] %s1054_s21 }
  0x5f   : > { %v986_v13 = vld [vmem:[%s1326_s8 + $0x50] sm:$0xff]   ;;  %v987_v15 = vld [vmem:[%s1326_s8 + $0x58] sm:$0xff]   ;;  %v980_v16 = vld [vmem:[%s1326_s8 + $0x20] sm:$0xff]   ;;  %s1056_s4 = scalar_lea.vmem %s1055_s21, 32  ;;  %p1057_p12 = scmp.lt.s32.totalorder %s1426_s11, %s1055_s21 }
  0x60   : > { %831 = vmatpush3.bf16.msra.mxu0 %v969_v1  ;;  %885 = vmatpush3.bf16.msra.mxu1 %v969_v1  ;;  %v988_v17 = vld [vmem:[%s1326_s8 + $0x60] sm:$0xff]   ;;  %v981_v18 = vld [vmem:[%s1326_s8 + $0x28] sm:$0xff]   ;;  %v982_v20 = vld [vmem:[%s1326_s8 + $0x30] sm:$0xff]   ;;  %p1052_p6 = pnand %p1051_p4, %p1263_p10  ;;  %p1058_p11 = scmp.lt.s32.totalorder %s1056_s4, %s1050_s26 }
  0x61   : > { %832 = vmatprep.subr.bf16.mxu0 %v970_v2  ;;  %878 = vmatprep.subr.bf16.mxu1 %v970_v2  ;;  %v989_v19 = vld [vmem:[%s1326_s8 + $0x68] sm:$0xff]   ;;  %v990_v21 = vld [vmem:[%s1326_s8 + $0x70] sm:$0xff]   ;;  %v983_v22 = vld [vmem:[%s1326_s8 + $0x38] sm:$0xff]  }
  0x62   : > { %v991_v23 = vld [vmem:[%s1326_s8 + $0x78] sm:$0xff]   ;;  %p1053_p8 = pneg %p1052_p6  ;;  %p1059_p0 = por %p1058_p11, %p1057_p12 }
  0x63   : > { %v1355_v25 = vld [vmem:[%s1475_s2] ss:$0 sm:$0xff] }
  0x64   : > { %833 = vmatpush3.bf16.msra.mxu0 %v970_v2  ;;  %886 = vmatpush3.bf16.msra.mxu1 %v970_v2  ;;  %p1060_p5 = pnand %p1059_p0, %p1053_p8 }
  0x65   : > { %834 = vmatprep.subr.bf16.mxu0 %v971_v3  ;;  %879 = vmatprep.subr.bf16.mxu1 %v971_v3 }
  0x68   : > { %835 = vmatpush3.bf16.msra.mxu0 %v971_v3  ;;  %887 = vmatpush3.bf16.msra.mxu1 %v971_v3 }
  0x69   : > { %836 = vmatprep.subr.bf16.mxu0 %v972_v5  ;;  %880 = vmatprep.subr.bf16.mxu1 %v972_v5 }
  0x6c   : > { %837 = vmatpush3.bf16.msra.mxu0 %v972_v5  ;;  %888 = vmatpush3.bf16.msra.mxu1 %v972_v5 }
  0x6d   : > { %838 = vmatprep.subr.bf16.mxu0 %v973_v6  ;;  %881 = vmatprep.subr.bf16.mxu1 %v973_v6 }
  0x70   : > { %839 = vmatpush3.bf16.msra.mxu0 %v973_v6  ;;  %889 = vmatpush3.bf16.msra.mxu1 %v973_v6 }
  0x71   : > { %840 = vmatprep.subr.bf16.mxu0 %v974_v8  ;;  %882 = vmatprep.subr.bf16.mxu1 %v974_v8 }
  0x74   : > { %841 = vmatpush3.bf16.msra.mxu0 %v974_v8  ;;  %890 = vmatpush3.bf16.msra.mxu1 %v974_v8 }
  0x75   : > { %842 = vmatprep.subr.bf16.mxu0 %v975_v9  ;;  %883 = vmatprep.subr.bf16.mxu1 %v975_v9 }
  0x78   : > { %843 = vmatpush3.bf16.msra.mxu0 %v975_v9  ;;  %891 = vmatpush3.bf16.msra.mxu1 %v975_v9 }
  0x7b   : > { %845 = vmatmul.mubr.bf16.vlgmr.msra.gmra.mrb[0].mxu0 %v977_v10  ;;  %861 = vmatmul.mubr.bf16.vlgmr.msra.gmra.mrb[0].mxu1 %v985_v11 }
  0x7c   : > { %848 = vmatprep.mubr.bf16.mxu0 %v978_v12  ;;  %864 = vmatprep.mubr.bf16.mxu1 %v986_v13 }
  0x83   : > { %849 = vmatmul.mubr.bf16.gmra.mrb[4].mxu0 %v979_v14  ;;  %865 = vmatmul.mubr.bf16.gmra.mrb[4].mxu1 %v987_v15 }
  0x84   : > { %852 = vmatprep.mubr.bf16.mxu0 %v980_v16  ;;  %868 = vmatprep.mubr.bf16.mxu1 %v988_v17 }
  0x8b   : > { %853 = vmatmul.mubr.bf16.gmra.mrb[8].mxu0 %v981_v18  ;;  %869 = vmatmul.mubr.bf16.gmra.mrb[8].mxu1 %v989_v19 }
  0x8c   : > { %856 = vmatprep.mubr.bf16.mxu0 %v982_v20  ;;  %872 = vmatprep.mubr.bf16.mxu1 %v990_v21 }
  0x93   : > { %857 = vmatmul.mubr.bf16.gmra.mrb[12].mxu0 %v983_v22  ;;  %873 = vmatmul.mubr.bf16.gmra.mrb[12].mxu1 %v991_v23 }
 0x14e   : > { %v846_v26 = vpop.f32.mrb[0].mxu0  ;;  %v1357_v27 = vpop.f32.mrb[0].mxu1 }
 0x14f   : > { %v459_v28 = vpop.f32.mrb[1].mxu0  ;;  %v1359_v29 = vpop.f32.mrb[1].mxu1  ;;  %v468_v35 = vadd.f32 %v846_v26, %v1355_v25 }
 0x150   : > { %v460_v30 = vadd.f32 %v1355_v25, %v459_v28  ;;  %v847_v31 = vpop.f32.mrb[2].mxu0  ;;  %v1362_v32 = vpop.f32.mrb[2].mxu1 }
 0x151   : > { %v462_v33 = vpop.f32.mrb[3].mxu0  ;;  %v1364_v34 = vpop.f32.mrb[3].mxu1  ;;  %v471_v38 = vadd.f32 %v847_v31, %v1355_v25  ;;  %v588_v40 = vmax.f32 %v468_v35, 0.0 }
 0x152   : > { %v463_v36 = vadd.f32 %v1355_v25, %v462_v33  ;;  %v586_v37 = vmax.f32 %v460_v30, 0.0 }
 0x153   : > { %v589_v46 = vmax.f32 %v471_v38, 0.0 }
 0x154   : > { %v587_v39 = vmax.f32 %v463_v36, 0.0 }
 0x156   : > { %v619_v41 = vadd.f32 %v587_v39, %v586_v37  ;;  %v850_v42 = vpop.f32.mrb[4].mxu0  ;;  %v1369_v43 = vpop.f32.mrb[4].mxu1 }
 0x157   : > { %v475_v44 = vpop.f32.mrb[5].mxu0  ;;  %v1371_v45 = vpop.f32.mrb[5].mxu1  ;;  %v484_v53 = vadd.f32 %v850_v42, %v1355_v25 }
 0x158   : > { %v620_v47 = vadd.f32 %v619_v41, %v588_v40  ;;  %v476_v48 = vadd.f32 %v1355_v25, %v475_v44  ;;  %v851_v49 = vpop.f32.mrb[6].mxu0  ;;  %v1374_v50 = vpop.f32.mrb[6].mxu1  ;;  %v524_v41 = vadd.f32 %v1355_v25, %v1359_v29  ;;  %v540_v29 = vadd.f32 %v1355_v25, %v1371_v45 }
 0x159   : > { %v478_v51 = vpop.f32.mrb[7].mxu0  ;;  %v1376_v52 = vpop.f32.mrb[7].mxu1  ;;  %v487_v58 = vadd.f32 %v851_v49, %v1355_v25  ;;  %v592_v60 = vmax.f32 %v484_v53, 0.0  ;;  %v527_v49 = vadd.f32 %v1355_v25, %v1364_v34 }
 0x15a   : > { %v590_v54 = vmax.f32 %v476_v48, 0.0  ;;  %v621_v55 = vadd.f32 %v620_v47, %v589_v46  ;;  %v479_v56 = vadd.f32 %v1355_v25, %v478_v51  ;;  %v602_v48 = vmax.f32 %v524_v41, 0.0 }
 0x15b   : > { %v593_v2 = vmax.f32 %v487_v58, 0.0  ;;  %v532_v51 = vadd.f32 %v1357_v27, %v1355_v25  ;;  %v543_v34 = vadd.f32 %v1355_v25, %v1376_v52  ;;  %v548_v27 = vadd.f32 %v1369_v43, %v1355_v25 }
 0x15c   : > { %v622_v57 = vadd.f32 %v621_v55, %v590_v54  ;;  %v591_v59 = vmax.f32 %v479_v56, 0.0  ;;  %v535_v55 = vadd.f32 %v1362_v32, %v1355_v25  ;;  %v603_v56 = vmax.f32 %v527_v49, 0.0 }
 0x15d   : > { %v551_v32 = vadd.f32 %v1374_v50, %v1355_v25  ;;  %v608_v45 = vmax.f32 %v548_v27, 0.0 }
 0x15e   : > { %v623_v61 = vadd.f32 %v622_v57, %v591_v59  ;;  %v854_v62 = vpop.f32.mrb[8].mxu0  ;;  %v1381_v63 = vpop.f32.mrb[8].mxu1  ;;  %v604_v57 = vmax.f32 %v532_v51, 0.0  ;;  %v605_v59 = vmax.f32 %v535_v55, 0.0 }
 0x15f   : > { %v491_v0 = vpop.f32.mrb[9].mxu0  ;;  %v555_v1 = vpop.f32.mrb[9].mxu1  ;;  %v500_v9 = vadd.f32 %v854_v62, %v1355_v25  ;;  %v564_v52 = vadd.f32 %v1381_v63, %v1355_v25 }
 0x160   : > { %v624_v3 = vadd.f32 %v623_v61, %v592_v60  ;;  %v492_v4 = vadd.f32 %v1355_v25, %v491_v0  ;;  %v855_v5 = vpop.f32.mrb[10].mxu0  ;;  %v1384_v6 = vpop.f32.mrb[10].mxu1  ;;  %v606_v61 = vmax.f32 %v540_v29, 0.0 }
 0x161   : > { %v494_v7 = vpop.f32.mrb[11].mxu0  ;;  %v558_v8 = vpop.f32.mrb[11].mxu1  ;;  %v503_v14 = vadd.f32 %v855_v5, %v1355_v25  ;;  %v596_v16 = vmax.f32 %v500_v9, 0.0  ;;  %v609_v5 = vmax.f32 %v551_v32, 0.0 }
 0x162   : > { %v594_v10 = vmax.f32 %v492_v4, 0.0  ;;  %v625_v11 = vadd.f32 %v624_v3, %v593_v2  ;;  %v495_v12 = vadd.f32 %v1355_v25, %v494_v7  ;;  %v607_v2 = vmax.f32 %v543_v34, 0.0 }
 0x163   : > { %v597_v22 = vmax.f32 %v503_v14, 0.0  ;;  %v556_v3 = vadd.f32 %v1355_v25, %v555_v1  ;;  %v612_v14 = vmax.f32 %v564_v52, 0.0 }
 0x164   : > { %v626_v13 = vadd.f32 %v625_v11, %v594_v10  ;;  %v595_v15 = vmax.f32 %v495_v12, 0.0  ;;  %v559_v10 = vadd.f32 %v1355_v25, %v558_v8  ;;  %v567_v12 = vadd.f32 %v1384_v6, %v1355_v25 }
 0x165   : > { %v610_v9 = vmax.f32 %v556_v3, 0.0 }
 0x166   : > { %v627_v17 = vadd.f32 %v626_v13, %v595_v15  ;;  %v858_v18 = vpop.f32.mrb[12].mxu0  ;;  %v874_v19 = vpop.f32.mrb[12].mxu1  ;;  %v611_v13 = vmax.f32 %v559_v10, 0.0  ;;  %v613_v15 = vmax.f32 %v567_v12, 0.0 }
 0x167   : > { %v507_v20 = vpop.f32.mrb[13].mxu0  ;;  %v571_v21 = vpop.f32.mrb[13].mxu1  ;;  %v516_v33 = vadd.f32 %v858_v18, %v1355_v25  ;;  %v580_v8 = vadd.f32 %v874_v19, %v1355_v25  ;;  %v618_v19 = vld [vmem:[#allocation2] sm:$0x1] }
 0x168   : > { %v628_v23 = vadd.f32 %v627_v17, %v596_v16  ;;  %v508_v24 = vadd.f32 %v1355_v25, %v507_v20  ;;  %v859_v26 = vpop.f32.mrb[14].mxu0  ;;  %v875_v28 = vpop.f32.mrb[14].mxu1  ;;  %v572_v50 = vadd.f32 %v1355_v25, %v571_v21 }
 0x169   : > { %v510_v30 = vpop.f32.mrb[15].mxu0  ;;  %v574_v31 = vpop.f32.mrb[15].mxu1  ;;  %v519_v39 = vadd.f32 %v859_v26, %v1355_v25  ;;  %v600_v42 = vmax.f32 %v516_v33, 0.0  ;;  %v583_v63 = vadd.f32 %v875_v28, %v1355_v25  ;;  %v616_v6 = vmax.f32 %v580_v8, 0.0 }
 0x16a   : > { %v598_v35 = vmax.f32 %v508_v24, 0.0  ;;  %v629_v36 = vadd.f32 %v628_v23, %v597_v22  ;;  %v511_v37 = vadd.f32 %v1355_v25, %v510_v30  ;;  %v614_v17 = vmax.f32 %v572_v50, 0.0 }
 0x16b   : > { %v601_v46 = vmax.f32 %v519_v39, 0.0  ;;  %v575_v18 = vadd.f32 %v1355_v25, %v574_v31  ;;  %v617_v26 = vmax.f32 %v583_v63, 0.0 }
 0x16c   : > { %v630_v38 = vadd.f32 %v629_v36, %v598_v35  ;;  %v599_v40 = vmax.f32 %v511_v37, 0.0 }
 0x16d   : > { %v615_v23 = vmax.f32 %v575_v18, 0.0 }
 0x16e   : > { %v631_v44 = vadd.f32 %v630_v38, %v599_v40 }
 0x170   : > { %v632_v47 = vadd.f32 %v631_v44, %v600_v42 }
 0x172   : > { %v633_v53 = vadd.f32 %v632_v47, %v601_v46 }
 0x174   : > { %v634_v54 = vadd.f32 %v633_v53, %v602_v48 }
 0x176   : > { %v635_v58 = vadd.f32 %v634_v54, %v603_v56 }
 0x178   : > { %v636_v60 = vadd.f32 %v635_v58, %v604_v57 }
 0x17a   : > { %v637_v62 = vadd.f32 %v636_v60, %v605_v59 }
 0x17c   : > { %v638_v0 = vadd.f32 %v637_v62, %v606_v61 }
 0x17e   : > { %v639_v4 = vadd.f32 %v638_v0, %v607_v2 }
 0x180   : > { %v640_v7 = vadd.f32 %v639_v4, %v608_v45 }
 0x182   : > { %v641_v11 = vadd.f32 %v640_v7, %v609_v5 }
 0x184   : > { %v642_v43 = vadd.f32 %v641_v11, %v610_v9 }
 0x186   : > { %v643_v1 = vadd.f32 %v642_v43, %v611_v13 }
 0x188   : > { %v644_v16 = vadd.f32 %v643_v1, %v612_v14 }
 0x18a   : > { %v645_v20 = vadd.f32 %v644_v16, %v613_v15 }
 0x18c   : > { %v646_v22 = vadd.f32 %v645_v20, %v614_v17 }
 0x18e   : > { %v647_v24 = vadd.f32 %v646_v22, %v615_v23 }
 0x190   : > { %v648_v21 = vadd.f32 %v647_v24, %v616_v6 }
 0x192   : > { %v649_v30 = vadd.f32 %v648_v21, %v617_v26 }
 0x194   : > { %v650_v33 = vrot.slane %v649_v30, 4 }
 0x196   : > { %v651_v35 = vadd.f32 %v650_v33, %v649_v30 }
 0x198   : > { %v652_v36 = vrot.slane %v651_v35, 2 }
 0x19a   : > { %v653_v37 = vadd.f32 %v652_v36, %v651_v35 }
 0x19c   : > { %v654_v31 = vrot.slane %v653_v37, 1 }
 0x19e   : > { %v655_v38 = vadd.f32 %v654_v31, %v653_v37 }
 0x1a0   : > { %v656_v39 = vadd.f32 %v655_v38, %v618_v19 }
 0x1a2   : > { %657 = vst [vmem:[#allocation2] sm:$0x1] %v656_v39 }
 0x1a9   : > { %v661_v25 = vld [vmem:[#allocation2] sm:$0x1] }
 0x1aa   : > { %v662_v28 = vmul.f32 0.00390625, %v661_v25 }
 0x1ac   : > { %663 = vst [vmem:[%s218_s10] sm:$0x1] %v662_v28 }
 0x1ad   : > { %1063 = shalt.err (!%p1060_p5)
}
 0x1ae   : > { %s1064_s6 = scalar_lea.hbm %s1424_s19, 16  ;;  %s1068_s7 = scalar_lea.hbm %s1476_s3, 32 }
 0x1af   : > { %p1065_p9 = scmp.ne.s32.totalorder %s1424_s19, %s1064_s6  ;;  %p1069_p3 = scmp.lt.u32.totalorder %s1424_s19, %s1476_s3 }
 0x1b0   : > { %p1070_p7 = scmp.lt.u32.totalorder %s1068_s7, %s1064_s6  ;;  %p1072_p4 = scmp.lt.u32.totalorder %s1064_s6, %s1424_s19 }
 0x1b1   : > { %p1066_p1 = pnand %p1065_p9, %p1263_p10 }
 0x1b2   : > { %p1071_p13 = por %p1070_p7, %p1069_p3 }
 0x1b3   : > { %p1067_p2 = pneg %p1066_p1 }
 0x1b4   : > { %p1073_p6 = por %p1072_p4, %p1071_p13 }
 0x1b6   : > { %p1074_p8 = pnand %p1073_p6, %p1067_p2 }
 0x1b8   : > { %1077 = shalt.err (!%p1074_p8)
}
 0x1b9   : > { %898 = dma.vmem_to_hbm [thread:$0]  (%p1263_p10), %s1426_s11, 16, %s1424_s19, %s665_s25  }
 0x1ba PF: > { %s689_s22 = sand.u32 1, %s1116_s12   ;;  %p1494_p12 = scmp.ne.s32.totalorder %s1484_s23, 0 }
 0x1bb   : > { %p1495_p11 = scmp.ge.s32.totalorder %s1136_s17, 2  ;;  %s690_s24 = scalar_lea.sflag [#allocation5], %s689_s22 }
 0x1bd   : > { %p909_p0 = pnand %p1495_p11, %p1494_p12 }
 0x1bf   : > { %1111 = dma.done.wait (!%p909_p0), %s690_s24, 16  }
 0x1c0   : > { %1113 = vsyncadd (!%p909_p0), %s690_s24, 4294967280  ;;  %s20_s17 = sadd.s32 1, %s1136_s17   ;;  %s1496_s12 = smov %s1120_s13 }
 0x1c1   : > { %p17_p5 = scmp.ge.s32.totalorder %s20_s17, 4   ;;  %s1497_s13 = smov %s1124_s14 }
 0x1c2   : > { %s1498_s14 = smov %s1272_s5  ;;  %s1499_s15 = smov %s1132_s16 }
 0x1c3   : > { %s1500_s16 = smov %s1502_s28  ;;  %19 = sbr.rel (!%p17_p5) target bundleno = 7 (0x7), region = 89 }
 0x1ca   :  { %694 = vsyncpa [#allocation4], 1 }
 0x1cb   :  { %696 = vsyncpa [#allocation4 + $0x1], 1 }
 0x1cc   :  { %697 = vsyncpa [#allocation7], 1 }
 0x1cd   :  { %698 = vsyncpa [#allocation5], 1 }
 0x1ce   :  { %700 = vsyncpa [#allocation5 + $0x1], 1 }

</bundles_post_ra>
